<compile_context>
chip_gen: v7x
topology: tpu7x:2x2x1
jax: 0.10.0
libtpu: 0.0.40
codegen_flags: <defaults>
</compile_context>

<pallas_src>
import functools

import numpy as np
import jax
import jax.numpy as jnp
from jax.experimental import pallas as pl
from jax.experimental.pallas import tpu as pltpu

VMEM_LIMIT = 48 * 1024 * 1024   # <= physical on v5e/v6e/v7x; our footprint is < 16 MiB


def _round_up(x, m):
    return (x + m - 1) // m * m


# ----------------------------------------------------------------------------
# Kernel 1: tiled matmul + bias (+ReLU).  Used by every 1x1 conv, the 5 stride-2
# im2col convs and the final fc.  bf16 operands, f32 accumulation, full K / N.
# ----------------------------------------------------------------------------
def _matmul_bias_kernel(a_ref, b_ref, bias_ref, o_ref, *, relu):
    r = jnp.dot(a_ref[...], b_ref[...], preferred_element_type=jnp.float32)
    r = r + bias_ref[...]
    if relu:
        r = jnp.maximum(r, 0.0)
    o_ref[...] = r.astype(o_ref.dtype)


def matmul_bias_act(a, b, bias, relu, out_dtype):
    M, K = a.shape
    _, N = b.shape
    tm = M if M <= 512 else 512
    return pl.pallas_call(
        functools.partial(_matmul_bias_kernel, relu=relu),
        out_shape=jax.ShapeDtypeStruct((M, N), out_dtype),
        grid_spec=pltpu.PrefetchScalarGridSpec(
            num_scalar_prefetch=0,
            grid=(pl.cdiv(M, tm),),
            in_specs=[
                pl.BlockSpec((tm, K), lambda i: (i, 0)),
                pl.BlockSpec((K, N), lambda i: (0, 0)),
                pl.BlockSpec((1, N), lambda i: (0, 0)),
            ],
            out_specs=pl.BlockSpec((tm, N), lambda i: (i, 0))),
        compiler_params=pltpu.CompilerParams(
            dimension_semantics=("parallel",),
            vmem_limit_bytes=VMEM_LIMIT),
        cost_estimate=pl.CostEstimate(
            flops=2 * M * K * N, transcendentals=0,
            bytes_accessed=M * K * 2 + K * N * 2 + M * N * 4),
    )(a, b, bias)


# ----------------------------------------------------------------------------
# Kernel 2: direct stride-1 KxK convolution (+ folded-BN bias + ReLU).
#   grid = (batch, h_tiles).  The whole padded NHWC image of one batch element is
#   kept VMEM-resident (input block index depends only on b), taps are folded into
#   the K dimension and a single MXU dot produces the row tile.
# ----------------------------------------------------------------------------
def _direct_conv_kernel(x_ref, w_ref, bias_ref, o_ref, *, kh, kw, th, owp, relu):
    row0 = pl.program_id(1) * th
    cur = x_ref.at[0]                                   # (hp, wp, cin) view
    cols = []
    for di in range(kh):
        for dj in range(kw):
            cols.append(cur[pl.ds(row0 + di, th), pl.ds(dj, owp), :])
    a = cols[0] if len(cols) == 1 else jnp.concatenate(cols, axis=-1)
    a = a.reshape(th * owp, a.shape[-1])                # (M, kh*kw*cin) bf16
    r = jnp.dot(a, w_ref[...], preferred_element_type=jnp.float32)
    r = r + bias_ref[...]
    if relu:
        r = jnp.maximum(r, 0.0)
    o_ref[...] = r.reshape(o_ref.shape).astype(o_ref.dtype)


@functools.partial(jax.jit, static_argnames=("kh", "kw", "ph", "pw", "relu"))
def direct_conv(x, wk, bias, *, kh, kw, ph, pw, relu=True):
    """x: (n,H,W,C) bf16, wk: (kh*kw*C, Cout) bf16, bias: (1, Cout) f32."""
    n, H, W, C = x.shape
    K, cout = wk.shape
    oh = H + 2 * ph - kh + 1
    ow = W + 2 * pw - kw + 1
    owp = _round_up(ow, 8)
    th = max(1, min(oh, max(1, 2048 // owp)))           # ~2048 output pixels / step
    nht = pl.cdiv(oh, th)
    hp = nht * th + kh - 1                              # all in-kernel row reads in-bounds
    wp = owp + kw - 1
    x_pad = jnp.pad(x, ((0, 0), (ph, hp - H - ph), (pw, wp - W - pw), (0, 0)))

    flops = 2 * n * oh * owp * K * cout
    bytes_acc = x_pad.size * 2 + wk.size * 2 + n * oh * owp * cout * 2

    out = pl.pallas_call(
        functools.partial(_direct_conv_kernel, kh=kh, kw=kw, th=th, owp=owp, relu=relu),
        out_shape=jax.ShapeDtypeStruct((n, oh, owp, cout), jnp.bfloat16),
        grid_spec=pltpu.PrefetchScalarGridSpec(
            num_scalar_prefetch=0,
            grid=(n, nht),
            in_specs=[
                pl.BlockSpec((1, hp, wp, C), lambda b, h: (b, 0, 0, 0)),  # resident image
                pl.BlockSpec((K, cout), lambda b, h: (0, 0)),             # resident weight
                pl.BlockSpec((1, cout), lambda b, h: (0, 0)),
            ],
            out_specs=pl.BlockSpec((1, th, owp, cout), lambda b, h: (b, h, 0, 0))),
        compiler_params=pltpu.CompilerParams(
            dimension_semantics=("parallel", "parallel"),
            vmem_limit_bytes=VMEM_LIMIT),
        cost_estimate=pl.CostEstimate(flops=flops, transcendentals=0,
                                      bytes_accessed=bytes_acc),
    )(x_pad, wk, bias)
    if ow != owp:
        out = out[:, :, :ow, :]
    return out


# ----------------------------------------------------------------------------
# Kernel 3: direct stride-1 3x3 window reduction (avg / max pooling), same
# resident-image structure.  Max runs in bf16; avg accumulates in f32.
# ----------------------------------------------------------------------------
def _direct_pool_kernel(x_ref, o_ref, *, kh, kw, th, owp, op, scale):
    row0 = pl.program_id(1) * th
    cur = x_ref.at[0]
    acc = None
    for di in range(kh):
        for dj in range(kw):
            v = cur[pl.ds(row0 + di, th), pl.ds(dj, owp), :]
            if op == "avg":
                v = v.astype(jnp.float32)
            if acc is None:
                acc = v
            elif op == "max":
                acc = jnp.maximum(acc, v)
            else:
                acc = acc + v
    if op == "avg":
        acc = acc * scale
    o_ref[...] = acc.reshape(o_ref.shape).astype(o_ref.dtype)


@functools.partial(jax.jit, static_argnames=("kernel", "pad", "op"))
def direct_pool_s1(x, *, kernel, pad, op):
    n, H, W, C = x.shape
    kh = kw = kernel
    oh = H + 2 * pad - kh + 1
    ow = W + 2 * pad - kw + 1
    owp = _round_up(ow, 8)
    th = max(1, min(oh, max(1, 2048 // owp)))
    nht = pl.cdiv(oh, th)
    hp = nht * th + kh - 1
    wp = owp + kw - 1
    x_pad = jnp.pad(x, ((0, 0), (pad, hp - H - pad), (pad, wp - W - pad), (0, 0)))

    out = pl.pallas_call(
        functools.partial(_direct_pool_kernel, kh=kh, kw=kw, th=th, owp=owp,
                          op=op, scale=1.0 / float(kh * kw)),
        out_shape=jax.ShapeDtypeStruct((n, oh, owp, C), x.dtype),
        grid_spec=pltpu.PrefetchScalarGridSpec(
            num_scalar_prefetch=0,
            grid=(n, nht),
            in_specs=[pl.BlockSpec((1, hp, wp, C), lambda b, h: (b, 0, 0, 0))],
            out_specs=pl.BlockSpec((1, th, owp, C), lambda b, h: (b, h, 0, 0))),
        compiler_params=pltpu.CompilerParams(
            dimension_semantics=("parallel", "parallel"),
            vmem_limit_bytes=VMEM_LIMIT),
    )(x_pad)
    if ow != owp:
        out = out[:, :, :ow, :]
    return out


def max_pool_3x3_s2(x):
    # stride-2 max pool = stride-1 window max (Pallas) + cheap strided subsample.
    # TODO(synk): a stride-2 row/col map inside the pool kernel would avoid the 4x
    # extra windows; kept simple since these pools are a small fraction of runtime.
    y = direct_pool_s1(x, kernel=3, pad=0, op="max")
    return y[:, ::2, ::2, :]


def avg_pool_3x3_s1_p1(x):
    # matches F.avg_pool2d(k=3, s=1, p=1, count_include_pad=True): zero pad, divide by 9
    return direct_pool_s1(x, kernel=3, pad=1, op="avg")


# ----------------------------------------------------------------------------
# 1x1 conv (pure matmul), stride-2 conv (im2col fallback, 5 layers), fc.
# ----------------------------------------------------------------------------
@jax.jit
def conv1x1(x, wk, bias):
    n, H, W, C = x.shape
    cout = wk.shape[-1]
    y = matmul_bias_act(x.reshape(n * H * W, C), wk, bias,
                        relu=True, out_dtype=jnp.bfloat16)
    return y.reshape(n, H, W, cout)


@functools.partial(jax.jit, static_argnames=("kh", "kw", "relu"))
def conv_s2_im2col(x, wk, bias, *, kh, kw, relu=True):
    """Stride-2, pad-0 conv via bf16 im2col + Pallas matmul (only 5 layers use this)."""
    n, H, W, C = x.shape
    cout = wk.shape[-1]
    oh = (H - kh) // 2 + 1
    ow = (W - kw) // 2 + 1
    cols = []
    for i in range(kh):
        for j in range(kw):
            cols.append(x[:, i:i + 2 * (oh - 1) + 1:2, j:j + 2 * (ow - 1) + 1:2, :])
    patches = jnp.stack(cols, axis=3)                    # (n, oh, ow, T, C) bf16
    a = patches.reshape(n * oh * ow, kh * kw * C)
    y = matmul_bias_act(a, wk, bias, relu=relu, out_dtype=jnp.bfloat16)
    return y.reshape(n, oh, ow, cout)


@jax.jit
def linear(x, w_t, b):
    # PyTorch Linear: y = x @ W^T + b  (W^T pre-transposed at build time)
    return matmul_bias_act(x, w_t, b, relu=False, out_dtype=jnp.float32)


# ----------------------------------------------------------------------------
# Kernel 4: global average pool (adaptive (1,1))
# ----------------------------------------------------------------------------
def _global_avg_kernel(x_ref, o_ref):
    o_ref[...] = jnp.mean(x_ref[...].astype(jnp.float32), axis=1)


@jax.jit
def global_avg_pool(x):
    n, h, w, c = x.shape
    xr = x.reshape(n, h * w, c)
    return pl.pallas_call(
        _global_avg_kernel,
        out_shape=jax.ShapeDtypeStruct((n, c), jnp.float32),
    )(xr)


# ----------------------------------------------------------------------------
# Conv dispatcher
# ----------------------------------------------------------------------------
def basic_conv(x, p, k=(1, 1), stride=1, padding=(0, 0)):
    kh, kw = k
    if stride == 1 and kh == 1 and kw == 1:
        assert padding == (0, 0)
        return conv1x1(x, p["wk"], p["bias"])
    if stride == 1:
        return direct_conv(x, p["wk"], p["bias"], kh=kh, kw=kw,
                           ph=padding[0], pw=padding[1], relu=True)
    assert padding == (0, 0)
    return conv_s2_im2col(x, p["wk"], p["bias"], kh=kh, kw=kw, relu=True)


# ----------------------------------------------------------------------------
# Inception blocks (torchvision architecture, eval mode)
# ----------------------------------------------------------------------------
def inception_a_fwd(x, p):
    b1 = basic_conv(x, p["branch1x1"], k=(1, 1))
    b5 = basic_conv(x, p["branch5x5_1"], k=(1, 1))
    b5 = basic_conv(b5, p["branch5x5_2"], k=(5, 5), padding=(2, 2))
    b3 = basic_conv(x, p["branch3x3dbl_1"], k=(1, 1))
    b3 = basic_conv(b3, p["branch3x3dbl_2"], k=(3, 3), padding=(1, 1))
    b3 = basic_conv(b3, p["branch3x3dbl_3"], k=(3, 3), padding=(1, 1))
    bp = avg_pool_3x3_s1_p1(x)
    bp = basic_conv(bp, p["branch_pool"], k=(1, 1))
    return jnp.concatenate([b1, b5, b3, bp], axis=-1)


def inception_b_fwd(x, p):
    b3 = basic_conv(x, p["branch3x3"], k=(3, 3), stride=2)
    bd = basic_conv(x, p["branch3x3dbl_1"], k=(1, 1))
    bd = basic_conv(bd, p["branch3x3dbl_2"], k=(3, 3), padding=(1, 1))
    bd = basic_conv(bd, p["branch3x3dbl_3"], k=(3, 3), stride=2)
    bp = max_pool_3x3_s2(x)
    return jnp.concatenate([b3, bd, bp], axis=-1)


def inception_c_fwd(x, p):
    b1 = basic_conv(x, p["branch1x1"], k=(1, 1))
    b7 = basic_conv(x, p["branch7x7_1"], k=(1, 1))
    b7 = basic_conv(b7, p["branch7x7_2"], k=(1, 7), padding=(0, 3))
    b7 = basic_conv(b7, p["branch7x7_3"], k=(7, 1), padding=(3, 0))
    bd = basic_conv(x, p["branch7x7dbl_1"], k=(1, 1))
    bd = basic_conv(bd, p["branch7x7dbl_2"], k=(7, 1), padding=(3, 0))
    bd = basic_conv(bd, p["branch7x7dbl_3"], k=(1, 7), padding=(0, 3))
    bd = basic_conv(bd, p["branch7x7dbl_4"], k=(7, 1), padding=(3, 0))
    bd = basic_conv(bd, p["branch7x7dbl_5"], k=(1, 7), padding=(0, 3))
    bp = avg_pool_3x3_s1_p1(x)
    bp = basic_conv(bp, p["branch_pool"], k=(1, 1))
    return jnp.concatenate([b1, b7, bd, bp], axis=-1)


def inception_d_fwd(x, p):
    b3 = basic_conv(x, p["branch3x3_1"], k=(1, 1))
    b3 = basic_conv(b3, p["branch3x3_2"], k=(3, 3), stride=2)
    b7 = basic_conv(x, p["branch7x7x3_1"], k=(1, 1))
    b7 = basic_conv(b7, p["branch7x7x3_2"], k=(1, 7), padding=(0, 3))
    b7 = basic_conv(b7, p["branch7x7x3_3"], k=(7, 1), padding=(3, 0))
    b7 = basic_conv(b7, p["branch7x7x3_4"], k=(3, 3), stride=2)
    bp = max_pool_3x3_s2(x)
    return jnp.concatenate([b3, b7, bp], axis=-1)


def inception_e_fwd(x, p):
    b1 = basic_conv(x, p["branch1x1"], k=(1, 1))
    b3 = basic_conv(x, p["branch3x3_1"], k=(1, 1))
    b3 = jnp.concatenate([
        basic_conv(b3, p["branch3x3_2a"], k=(1, 3), padding=(0, 1)),
        basic_conv(b3, p["branch3x3_2b"], k=(3, 1), padding=(1, 0)),
    ], axis=-1)
    bd = basic_conv(x, p["branch3x3dbl_1"], k=(1, 1))
    bd = basic_conv(bd, p["branch3x3dbl_2"], k=(3, 3), padding=(1, 1))
    bd = jnp.concatenate([
        basic_conv(bd, p["branch3x3dbl_3a"], k=(1, 3), padding=(0, 1)),
        basic_conv(bd, p["branch3x3dbl_3b"], k=(3, 1), padding=(1, 0)),
    ], axis=-1)
    bp = avg_pool_3x3_s1_p1(x)
    bp = basic_conv(bp, p["branch_pool"], k=(1, 1))
    return jnp.concatenate([b1, b3, bd, bp], axis=-1)


# ----------------------------------------------------------------------------
# Deterministic synthetic parameters (torchvision inception_v3 shapes),
# BN folded + weights reshaped to (kh*kw*Cin, Cout) bf16 ONCE at build time.
# TODO(synk): pretrained weights are not downloadable here; synthetic weights keep
# the exact architecture/forward semantics with deterministic values.
# ----------------------------------------------------------------------------
class ParamGen:
    def __init__(self, seed=0):
        self.rs = np.random.RandomState(seed)

    def conv_bn(self, cin, cout, kh, kw):
        fan_in = cin * kh * kw
        w = self.rs.normal(0.0, np.sqrt(2.0 / fan_in),
                           (cout, cin, kh, kw)).astype(np.float32)
        gamma = self.rs.uniform(0.8, 1.2, (cout,)).astype(np.float32)
        beta = self.rs.normal(0.0, 0.05, (cout,)).astype(np.float32)
        mean = self.rs.normal(0.0, 0.05, (cout,)).astype(np.float32)
        var = self.rs.uniform(0.5, 1.5, (cout,)).astype(np.float32)
        eps = 1e-3
        scale = gamma / np.sqrt(var + eps)
        wf = w * scale[:, None, None, None]
        bias = beta - mean * scale
        # (cout, cin, kh, kw) -> (kh, kw, cin, cout) -> (kh*kw*cin, cout)
        wk = np.transpose(wf, (2, 3, 1, 0)).reshape(kh * kw * cin, cout)
        return {"wk": jnp.asarray(wk, jnp.bfloat16),
                "bias": jnp.asarray(bias.reshape(1, cout), jnp.float32)}

    def linear(self, cin, cout):
        bound = 1.0 / np.sqrt(cin)
        w = self.rs.uniform(-bound, bound, (cout, cin)).astype(np.float32)
        b = self.rs.uniform(-bound, bound, (cout,)).astype(np.float32)
        return {"w_t": jnp.asarray(w.T, jnp.bfloat16),
                "b": jnp.asarray(b.reshape(1, cout), jnp.float32)}


def build_inception_v3_params(seed=0):
    g = ParamGen(seed)

    def inc_a(cin, pool_features):
        return {
            "branch1x1": g.conv_bn(cin, 64, 1, 1),
            "branch5x5_1": g.conv_bn(cin, 48, 1, 1),
            "branch5x5_2": g.conv_bn(48, 64, 5, 5),
            "branch3x3dbl_1": g.conv_bn(cin, 64, 1, 1),
            "branch3x3dbl_2": g.conv_bn(64, 96, 3, 3),
            "branch3x3dbl_3": g.conv_bn(96, 96, 3, 3),
            "branch_pool": g.conv_bn(cin, pool_features, 1, 1),
        }

    def inc_b(cin):
        return {
            "branch3x3": g.conv_bn(cin, 384, 3, 3),
            "branch3x3dbl_1": g.conv_bn(cin, 64, 1, 1),
            "branch3x3dbl_2": g.conv_bn(64, 96, 3, 3),
            "branch3x3dbl_3": g.conv_bn(96, 96, 3, 3),
        }

    def inc_c(cin, c7):
        return {
            "branch1x1": g.conv_bn(cin, 192, 1, 1),
            "branch7x7_1": g.conv_bn(cin, c7, 1, 1),
            "branch7x7_2": g.conv_bn(c7, c7, 1, 7),
            "branch7x7_3": g.conv_bn(c7, 192, 7, 1),
            "branch7x7dbl_1": g.conv_bn(cin, c7, 1, 1),
            "branch7x7dbl_2": g.conv_bn(c7, c7, 7, 1),
            "branch7x7dbl_3": g.conv_bn(c7, c7, 1, 7),
            "branch7x7dbl_4": g.conv_bn(c7, c7, 7, 1),
            "branch7x7dbl_5": g.conv_bn(c7, 192, 1, 7),
            "branch_pool": g.conv_bn(cin, 192, 1, 1),
        }

    def inc_d(cin):
        return {
            "branch3x3_1": g.conv_bn(cin, 192, 1, 1),
            "branch3x3_2": g.conv_bn(192, 320, 3, 3),
            "branch7x7x3_1": g.conv_bn(cin, 192, 1, 1),
            "branch7x7x3_2": g.conv_bn(192, 192, 1, 7),
            "branch7x7x3_3": g.conv_bn(192, 192, 7, 1),
            "branch7x7x3_4": g.conv_bn(192, 192, 3, 3),
        }

    def inc_e(cin):
        return {
            "branch1x1": g.conv_bn(cin, 320, 1, 1),
            "branch3x3_1": g.conv_bn(cin, 384, 1, 1),
            "branch3x3_2a": g.conv_bn(384, 384, 1, 3),
            "branch3x3_2b": g.conv_bn(384, 384, 3, 1),
            "branch3x3dbl_1": g.conv_bn(cin, 448, 1, 1),
            "branch3x3dbl_2": g.conv_bn(448, 384, 3, 3),
            "branch3x3dbl_3a": g.conv_bn(384, 384, 1, 3),
            "branch3x3dbl_3b": g.conv_bn(384, 384, 3, 1),
            "branch_pool": g.conv_bn(cin, 192, 1, 1),
        }

    return {
        "Conv2d_1a_3x3": g.conv_bn(3, 32, 3, 3),
        "Conv2d_2a_3x3": g.conv_bn(32, 32, 3, 3),
        "Conv2d_2b_3x3": g.conv_bn(32, 64, 3, 3),
        "Conv2d_3b_1x1": g.conv_bn(64, 80, 1, 1),
        "Conv2d_4a_3x3": g.conv_bn(80, 192, 3, 3),
        "Mixed_5b": inc_a(192, 32),
        "Mixed_5c": inc_a(256, 64),
        "Mixed_5d": inc_a(288, 64),
        "Mixed_6a": inc_b(288),
        "Mixed_6b": inc_c(768, 128),
        "Mixed_6c": inc_c(768, 160),
        "Mixed_6d": inc_c(768, 160),
        "Mixed_6e": inc_c(768, 192),
        "Mixed_7a": inc_d(768),
        "Mixed_7b": inc_e(1280),
        "Mixed_7c": inc_e(2048),
        "fc": g.linear(2048, 1000),
    }


# ----------------------------------------------------------------------------
# Full forward (mirrors Inceptionv3OnlyFeature.forward, eval mode)
# ----------------------------------------------------------------------------
def inception_v3_only_feature(x_nchw, P):
    x = jnp.transpose(x_nchw, (0, 2, 3, 1)).astype(jnp.bfloat16)     # NCHW -> NHWC bf16
    x = basic_conv(x, P["Conv2d_1a_3x3"], k=(3, 3), stride=2)
    x = basic_conv(x, P["Conv2d_2a_3x3"], k=(3, 3))
    x = basic_conv(x, P["Conv2d_2b_3x3"], k=(3, 3), padding=(1, 1))
    x = max_pool_3x3_s2(x)                                           # maxpool1
    x = basic_conv(x, P["Conv2d_3b_1x1"], k=(1, 1))
    x = basic_conv(x, P["Conv2d_4a_3x3"], k=(3, 3))
    x = max_pool_3x3_s2(x)                                           # maxpool2
    x = inception_a_fwd(x, P["Mixed_5b"])
    x = inception_a_fwd(x, P["Mixed_5c"])
    x = inception_a_fwd(x, P["Mixed_5d"])
    x = inception_b_fwd(x, P["Mixed_6a"])
    x = inception_c_fwd(x, P["Mixed_6b"])
    x = inception_c_fwd(x, P["Mixed_6c"])
    x = inception_c_fwd(x, P["Mixed_6d"])
    x = inception_c_fwd(x, P["Mixed_6e"])
    x = inception_d_fwd(x, P["Mixed_7a"])
    x = inception_e_fwd(x, P["Mixed_7b"])
    x = inception_e_fwd(x, P["Mixed_7c"])                            # (N, h, w, 2048)

    pooled = global_avg_pool(x)                                      # (N, 2048) f32
    feat = pooled[:, :, None, None]                                  # (N, 2048, 1, 1)
    # TODO(synk): nn.Dropout is identity in eval mode -> no-op here.
    logits = linear(pooled.astype(jnp.bfloat16), P["fc"]["w_t"], P["fc"]["b"])
    return feat, logits


if __name__ == "__main__":
    key = jax.random.PRNGKey(0)
    # Smallest valid input for inception_v3's strided/valid conv chain
    # (75x75 -> final 1x1 spatial, 2048 channels), batch=2, NCHW like PyTorch.
    x = jax.random.normal(key, (2, 3, 75, 75), dtype=jnp.float32)

    params = build_inception_v3_params(seed=0)
    feat, logits = inception_v3_only_feature(x, params)
    feat, logits = jax.block_until_ready((feat, logits))

    assert feat.shape == (2, 2048, 1, 1), feat.shape
    assert logits.shape == (2, 1000), logits.shape
    assert bool(jnp.all(jnp.isfinite(feat))) and bool(jnp.all(jnp.isfinite(logits)))
    print("KERNEL_OK")
</pallas_src>

<mosaic_0001>
module attributes {stable_mosaic.version = 11 : i64} {
  func.func @_matmul_bias_kernel(%arg0: i32, %arg1: memref<512x27xbf16, #tpu.memory_space<vmem>>, %arg2: memref<27x32xbf16, #tpu.memory_space<vmem>>, %arg3: memref<1x32xf32, #tpu.memory_space<vmem>>, %arg4: memref<512x32xbf16, #tpu.memory_space<vmem>>) attributes {dimension_semantics = [#tpu.dimension_semantics<parallel>], iteration_bounds = array<i64: 6>, scalar_prefetch = 0 : i64, scratch_operands = 0 : i64, tpu.core_type = #tpu.core_type<tc>, window_params = [{transform_indices = @transform_0, window_bounds = array<i64: 512, 27>}, {pipeline_mode = #tpu.pipeline_mode<synchronous>, transform_indices = @transform_1, window_bounds = array<i64: 27, 32>}, {pipeline_mode = #tpu.pipeline_mode<synchronous>, transform_indices = @transform_2, window_bounds = array<i64: 1, 32>}, {transform_indices = @transform_3, window_bounds = array<i64: 512, 32>}]} {
    %c0 = arith.constant 0 : index
    %c0_0 = arith.constant 0 : index
    %0 = vector.load %arg1[%c0, %c0_0] : memref<512x27xbf16, #tpu.memory_space<vmem>>, vector<512x27xbf16>
    %c0_1 = arith.constant 0 : index
    %c0_2 = arith.constant 0 : index
    %1 = vector.load %arg2[%c0_1, %c0_2] : memref<27x32xbf16, #tpu.memory_space<vmem>>, vector<27x32xbf16>
    %cst = arith.constant dense<0.000000e+00> : vector<512x32xf32>
    %2 = tpu.matmul %0, %1, %cst {dimension_numbers = #tpu.dot_dimension_numbers<[1], [0], [0], [1], [0, 0, 1, 1], [], []>} : vector<512x27xbf16>, vector<27x32xbf16>, vector<512x32xf32> -> vector<512x32xf32>
    %c0_3 = arith.constant 0 : index
    %c0_4 = arith.constant 0 : index
    %3 = vector.load %arg3[%c0_3, %c0_4] : memref<1x32xf32, #tpu.memory_space<vmem>>, vector<1x32xf32>
    %4 = vector.broadcast %3 : vector<1x32xf32> to vector<512x32xf32>
    %5 = arith.addf %2, %4 : vector<512x32xf32>
    %cst_5 = arith.constant 0.000000e+00 : f32
    %6 = vector.broadcast %cst_5 : f32 to vector<512x32xf32>
    %7 = arith.maximumf %5, %6 : vector<512x32xf32>
    %8 = arith.truncf %7 : vector<512x32xf32> to vector<512x32xbf16>
    %c0_6 = arith.constant 0 : index
    %c0_7 = arith.constant 0 : index
    %9 = vector.load %arg4[%c0_6, %c0_7] : memref<512x32xbf16, #tpu.memory_space<vmem>>, vector<512x32xbf16>
    tpu.vector_store %arg4[%c0_6, %c0_7], %8 {strides = array<i32>} : memref<512x32xbf16, #tpu.memory_space<vmem>>, vector<512x32xbf16>,
    return
  }
  func.func @transform_0(%arg0: i32) -> (i32, i32) {
    %c0_i32 = arith.constant 0 : i32
    %c0_i32_0 = arith.constant 0 : i32
    return %arg0, %c0_i32 : i32, i32
  }
  func.func @transform_1(%arg0: i32) -> (i32, i32) {
    %c0_i32 = arith.constant 0 : i32
    %c0_i32_0 = arith.constant 0 : i32
    %c0_i32_1 = arith.constant 0 : i32
    return %c0_i32, %c0_i32_0 : i32, i32
  }
  func.func @transform_2(%arg0: i32) -> (i32, i32) {
    %c0_i32 = arith.constant 0 : i32
    %c0_i32_0 = arith.constant 0 : i32
    %c0_i32_1 = arith.constant 0 : i32
    return %c0_i32, %c0_i32_0 : i32, i32
  }
  func.func @transform_3(%arg0: i32) -> (i32, i32) {
    %c0_i32 = arith.constant 0 : i32
    %c0_i32_0 = arith.constant 0 : i32
    return %arg0, %c0_i32 : i32, i32
  }
}

</mosaic_0001>

<bundles_post_ra>
// kernel: conv_s2_im2col.1
= control target key start
LH: loop header
LB: loop body
LE: loop exit
PB: predicated region body
PF: predicated region fallthrough
CT: control target
= control target key end

     0   :  { %s2243_s12 = smov 0   ;;  %s2245_s13 = smov 0   ;;  %s2751_s0 = inlined_call_operand.vmem [shape: bf16[2738,27], index: 0, kind: input, shape index: {}]   ;;  %s2752_s1 = inlined_call_operand.vmem [shape: bf16[27,32], index: 1, kind: input, shape index: {}]   ;;  %s2753_s2 = inlined_call_operand.vmem [shape: f32[1,32], index: 2, kind: input, shape index: {}]   ;;  %s2754_s3 = inlined_call_operand.vmem [shape: bf16[2738,32], index: 3, kind: output, shape index: {}]  }
   0x1   :  { %s2247_s14 = smov 0  }
   0x2 LB: > { %s2256_s15 = sadd.s32 4294967295, %s2188_s14   ;;  %s2258_s16 = sadd.s32 1, %s2188_s14   ;;  %s2188_s14 = sphi %s2247_s14, %s2761_s14   ;;  %s2184_s13 = sphi %s2245_s13, %s2760_s13   ;;  %s2180_s12 = sphi %s2243_s12, %s2759_s12  }
   0x3   : > { %s85_s17 = ssub.s32 %s2188_s14, %s2258_s16  ;;  %s88_s18 = sadd.s32 1, %s2184_s13 }
   0x4   : > { %p86_p0 = scmp.eq.s32.totalorder %s85_s17, 0  ;;  %p98_p1 = scmp.ne.s32.totalorder %s2184_s13, %s2180_s12 }
   0x5   : > { %p99_p2 = scmp.eq.s32.totalorder %s2256_s15, 5  ;;  %p1686_p3 = scmp.ge.s32.totalorder %s2188_s14, 1 }
   0x6   : > { %s2266_s19 = scalar_select %p86_p0, %s2184_s13, %s88_s18  }
   0x7   : > { %p2268_p4 = por %p99_p2, %p98_p1  ;;  %p146_p5 = scmp.lt.s32.totalorder %s2188_s14, 7 }
   0x9   : > { %p147_p6 = pnand %p1686_p3, %p146_p5 }
   0xa   : > { %v2100_v0 = vld [vmem:[%s2752_s1] sm:$0xff] (!%p147_p6)   ;;  %vm536_vm0 = vcmask (!%p147_p6), 1044480   ;;  %v2101_v1 = vld [vmem:[%s2752_s1 + $0x8] sm:$0x3f] (!%p147_p6)   ;;  %vm537_vm1 = vcmask (!%p147_p6), 1045504   ;;  %s2279_s25 = sshll.u32 (!%p147_p6), %s2256_s15, 6 }
   0xb   : > { %150 = sbr.rel (%p147_p6) target bundleno = 394 (0x18a), region = 32  ;;  %1939 = vmatprep.subr.bf16.mxu0 (!%p147_p6), %v2100_v0  ;;  %2007 = vmatprep.subr.bf16.mxu1 (!%p147_p6), %v2100_v0  ;;  %v2222_v2 = vmov (!%p147_p6), 65535   ;;  %p178_p7 = scmp.lt.s32.totalorder (!%p147_p6), %s2279_s25, 342  ;;  %vm439_vm2 = vcmask (!%p147_p6), 220160   ;;  %v2356_v38 = vld [vmem:[%s2753_s2] ss:$0 sm:$0xff] (!%p147_p6) }
   0xc   : > { %1940 = vmatpush3.bf16.msra.mxu0 (!%p147_p6), %v2100_v0  ;;  %2009 = vmatpush3.bf16.msra.mxu1 (!%p147_p6), %v2100_v0  ;;  %v538_v3 = vsel (!%p147_p6), %vm536_vm0, 4294967295, %v2222_v2  ;;  %s170_s4 = sand.u32 (!%p147_p6), 1, %s2180_s12   ;;  %vm1152_vm3 = vcmask (!%p147_p6), 257024  }
   0xd   : > { %v539_v4 = vsel (!%p147_p6), %vm537_vm1, %v538_v3, 0  ;;  %s1687_s7 = sshll.u32 (!%p147_p6), %s170_s4, 8 }
   0xe   : > { %v541_v5 = vand.u32 (!%p147_p6), %v2101_v1, %v539_v4  ;;  %s2366_s8 = scalar_lea.vmem (!%p147_p6), [#allocation2], %s1687_s7  }
  0x10   : > { %1941 = vmatprep.subr.bf16.mxu0 (!%p147_p6), %v541_v5  ;;  %2008 = vmatprep.subr.bf16.mxu1 (!%p147_p6), %v541_v5 }
  0x11   : > { %1942 = vmatpush3.bf16.msra.mxu0 (!%p147_p6), %v541_v5  ;;  %2010 = vmatpush3.bf16.msra.mxu1 (!%p147_p6), %v541_v5 }
  0x12   : > { %s179_s26 = scalar_select %p178_p7, %s2279_s25, 342 }
  0x13   : > { %s1225_s9 = ssub.s32 (%p2268_p4), 343, %s2279_s25  ;;  %s1902_s10 = sshll.u32 (%p2268_p4), %s2256_s15, 8 }
  0x14   : > { %s1689_s27 = sshll.u32 %s179_s26, 2  ;;  %p1226_p8 = scmp.lt.s32.totalorder (%p2268_p4), %s1225_s9, 64 }
  0x15   : > { %s2286_s30 = scalar_lea.vmem %s2751_s0, %s1689_s27  ;;  %s2559_s14 = scalar_lea.vmem (%p2268_p4), %s2754_s3, %s1902_s10  }
  0x16   : > { %v2102_v6 = vld [vmem:[%s2286_s30] sm:$0xff]   ;;  %v2104_v8 = vld [vmem:[%s2286_s30 + $0x8] sm:$0xff]   ;;  %v2106_v10 = vld [vmem:[%s2286_s30 + $0x10] sm:$0xff]  }
  0x17   : > { %v2103_v7 = vld [vmem:[%s2286_s30 + $0x80] sm:$0xff]   ;;  %1943 = vmatprep.mubr.msk.bf16.mxu0 %vm439_vm2, %v2102_v6  ;;  %v2105_v9 = vld [vmem:[%s2286_s30 + $0x88] sm:$0xff]   ;;  %v2107_v11 = vld [vmem:[%s2286_s30 + $0x90] sm:$0xff]  }
  0x18   : > { %1975 = vmatprep.mubr.msk.bf16.mxu1 %vm439_vm2, %v2103_v7  ;;  %1944 = vmatmul.mubr.msk.bf16.vlgmr.msra.gmra.mrb[0].mxu0 %vm439_vm2, %v2104_v8  ;;  %v2108_v12 = vld [vmem:[%s2286_s30 + $0x18] sm:$0xff]   ;;  %v2110_v14 = vld [vmem:[%s2286_s30 + $0x20] sm:$0xff]   ;;  %v2112_v16 = vld [vmem:[%s2286_s30 + $0x28] sm:$0xff]  }
  0x19   : > { %1976 = vmatmul.mubr.msk.bf16.vlgmr.msra.gmra.mrb[0].mxu1 %vm439_vm2, %v2105_v9  ;;  %1947 = vmatprep.mubr.msk.bf16.mxu0 %vm439_vm2, %v2106_v10  ;;  %v2109_v13 = vld [vmem:[%s2286_s30 + $0x98] sm:$0xff]   ;;  %v2111_v15 = vld [vmem:[%s2286_s30 + $0xa0] sm:$0xff]   ;;  %v2113_v17 = vld [vmem:[%s2286_s30 + $0xa8] sm:$0xff]  }
  0x1a   : > { %1979 = vmatprep.mubr.msk.bf16.mxu1 %vm439_vm2, %v2107_v11  ;;  %v2114_v18 = vld [vmem:[%s2286_s30 + $0x30] sm:$0xff]   ;;  %v2116_v20 = vld [vmem:[%s2286_s30 + $0x38] sm:$0xff]   ;;  %v2118_v22 = vld [vmem:[%s2286_s30 + $0x40] sm:$0xff]  }
  0x1b   : > { %v2115_v19 = vld [vmem:[%s2286_s30 + $0xb0] sm:$0xff]   ;;  %v2117_v21 = vld [vmem:[%s2286_s30 + $0xb8] sm:$0xff]   ;;  %v2119_v23 = vld [vmem:[%s2286_s30 + $0xc0] sm:$0xff]  }
  0x1c   : > { %v2120_v24 = vld [vmem:[%s2286_s30 + $0x48] sm:$0xff]   ;;  %v2122_v26 = vld [vmem:[%s2286_s30 + $0x50] sm:$0xff]   ;;  %v2124_v28 = vld [vmem:[%s2286_s30 + $0x58] sm:$0xff]  }
  0x1d   : > { %v2121_v25 = vld [vmem:[%s2286_s30 + $0xc8] sm:$0xff]   ;;  %v2123_v27 = vld [vmem:[%s2286_s30 + $0xd0] sm:$0xff]   ;;  %v2125_v29 = vld [vmem:[%s2286_s30 + $0xd8] sm:$0xff]  }
  0x1e   : > { %v2126_v30 = vld [vmem:[%s2286_s30 + $0x60] sm:$0xff]   ;;  %v2128_v32 = vld [vmem:[%s2286_s30 + $0x68] sm:$0xff]   ;;  %v2130_v34 = vld [vmem:[%s2286_s30 + $0x70] sm:$0xff]  }
  0x1f   : > { %v2127_v31 = vld [vmem:[%s2286_s30 + $0xe0] sm:$0xff]   ;;  %v2129_v33 = vld [vmem:[%s2286_s30 + $0xe8] sm:$0xff]   ;;  %v2131_v35 = vld [vmem:[%s2286_s30 + $0xf0] sm:$0xff]  }
  0x20   : > { %1948 = vmatmul.mubr.msk.bf16.gmra.mrb[4].mxu0 %vm439_vm2, %v2108_v12  ;;  %v2132_v36 = vld [vmem:[%s2286_s30 + $0x78] sm:$0xff]  }
  0x21   : > { %1980 = vmatmul.mubr.msk.bf16.gmra.mrb[4].mxu1 %vm439_vm2, %v2109_v13  ;;  %1951 = vmatprep.mubr.msk.bf16.mxu0 %vm439_vm2, %v2110_v14  ;;  %v2133_v37 = vld [vmem:[%s2286_s30 + $0xf8] sm:$0xff]  }
  0x22   : > { %1983 = vmatprep.mubr.msk.bf16.mxu1 %vm439_vm2, %v2111_v15 }
  0x28   : > { %1952 = vmatmul.mubr.msk.bf16.gmra.mrb[8].mxu0 %vm439_vm2, %v2112_v16 }
  0x29   : > { %1984 = vmatmul.mubr.msk.bf16.gmra.mrb[8].mxu1 %vm439_vm2, %v2113_v17  ;;  %1955 = vmatprep.mubr.msk.bf16.mxu0 %vm439_vm2, %v2114_v18 }
  0x2a   : > { %1987 = vmatprep.mubr.msk.bf16.mxu1 %vm439_vm2, %v2115_v19 }
  0x30   : > { %1956 = vmatmul.mubr.msk.bf16.gmra.mrb[12].mxu0 %vm439_vm2, %v2116_v20 }
  0x31   : > { %1988 = vmatmul.mubr.msk.bf16.gmra.mrb[12].mxu1 %vm439_vm2, %v2117_v21  ;;  %1959 = vmatprep.mubr.msk.bf16.mxu0 %vm439_vm2, %v2118_v22 }
  0x32   : > { %1991 = vmatprep.mubr.msk.bf16.mxu1 %vm439_vm2, %v2119_v23 }
  0x38   : > { %1960 = vmatmul.mubr.msk.bf16.gmra.mrb[16].mxu0 %vm439_vm2, %v2120_v24 }
  0x39   : > { %1992 = vmatmul.mubr.msk.bf16.gmra.mrb[16].mxu1 %vm439_vm2, %v2121_v25  ;;  %1963 = vmatprep.mubr.msk.bf16.mxu0 %vm439_vm2, %v2122_v26 }
  0x3a   : > { %1995 = vmatprep.mubr.msk.bf16.mxu1 %vm439_vm2, %v2123_v27 }
  0x40   : > { %1964 = vmatmul.mubr.msk.bf16.gmra.mrb[20].mxu0 %vm439_vm2, %v2124_v28 }
  0x41   : > { %1996 = vmatmul.mubr.msk.bf16.gmra.mrb[20].mxu1 %vm439_vm2, %v2125_v29  ;;  %1967 = vmatprep.mubr.msk.bf16.mxu0 %vm439_vm2, %v2126_v30 }
  0x42   : > { %1999 = vmatprep.mubr.msk.bf16.mxu1 %vm439_vm2, %v2127_v31 }
  0x48   : > { %1968 = vmatmul.mubr.msk.bf16.gmra.mrb[24].mxu0 %vm439_vm2, %v2128_v32 }
  0x49   : > { %2000 = vmatmul.mubr.msk.bf16.gmra.mrb[24].mxu1 %vm439_vm2, %v2129_v33  ;;  %1971 = vmatprep.mubr.msk.bf16.mxu0 %vm439_vm2, %v2130_v34 }
  0x4a   : > { %2003 = vmatprep.mubr.msk.bf16.mxu1 %vm439_vm2, %v2131_v35 }
  0x50   : > { %1972 = vmatmul.mubr.msk.bf16.gmra.mrb[28].mxu0 %vm439_vm2, %v2132_v36 }
  0x51   : > { %2004 = vmatmul.mubr.msk.bf16.gmra.mrb[28].mxu1 %vm439_vm2, %v2133_v37 }
  0xeb   : > { %v1945_v39 = vpop.f32.mrb[0].mxu0 }
  0xec   : > { %v586_v40 = vadd.f32 %v1945_v39, %v2356_v38  ;;  %v1977_v41 = vpop.f32.mrb[0].mxu1  ;;  %v577_v42 = vpop.f32.mrb[1].mxu0 }
  0xed   : > { %v714_v43 = vadd.f32 %v1977_v41, %v2356_v38  ;;  %v578_v44 = vadd.f32 %v2356_v38, %v577_v42  ;;  %v705_v45 = vpop.f32.mrb[1].mxu1  ;;  %v1946_v46 = vpop.f32.mrb[2].mxu0 }
  0xee   : > { %v834_v47 = vmax.f32 %v586_v40, 0.0  ;;  %v706_v48 = vadd.f32 %v2356_v38, %v705_v45  ;;  %v589_v49 = vadd.f32 %v1946_v46, %v2356_v38  ;;  %v1978_v50 = vpop.f32.mrb[2].mxu1  ;;  %v580_v51 = vpop.f32.mrb[3].mxu0 }
  0xef   : > { %v866_v52 = vmax.f32 %v714_v43, 0.0  ;;  %v832_v53 = vmax.f32 %v578_v44, 0.0  ;;  %v717_v54 = vadd.f32 %v1978_v50, %v2356_v38  ;;  %v581_v55 = vadd.f32 %v2356_v38, %v580_v51  ;;  %v708_v56 = vpop.f32.mrb[3].mxu1 }
  0xf0   : > { %v1840_v57 = vpack.c.bf16 %v834_v47, %v834_v47  ;;  %v864_v58 = vmax.f32 %v706_v48, 0.0  ;;  %v835_v59 = vmax.f32 %v589_v49, 0.0  ;;  %v709_v60 = vadd.f32 %v2356_v38, %v708_v56 }
  0xf1   : > { %v1872_v61 = vpack.c.bf16 %v866_v52, %v866_v52  ;;  %v1838_v62 = vpack.c.bf16 %v832_v53, %v832_v53  ;;  %v867_v63 = vmax.f32 %v717_v54, 0.0  ;;  %v833_v0 = vmax.f32 %v581_v55, 0.0 }
  0xf2   : > { %1155 = vst.msk [vmem:[%s2366_s8 + $0x8] sm:$0xf] %vm1152_vm3, %v1840_v57  ;;  %v1870_v1 = vpack.c.bf16 %v864_v58, %v864_v58  ;;  %v1841_v2 = vpack.c.bf16 %v835_v59, %v835_v59  ;;  %v865_v3 = vmax.f32 %v709_v60, 0.0 }
  0xf3   : > { %1187 = vst.msk [vmem:[%s2366_s8 + $0x88] sm:$0xf] %vm1152_vm3, %v1872_v61  ;;  %1153 = vst.msk [vmem:[%s2366_s8] sm:$0xf] %vm1152_vm3, %v1838_v62  ;;  %v1873_v4 = vpack.c.bf16 %v867_v63, %v867_v63  ;;  %v1839_v5 = vpack.c.bf16 %v833_v0, %v833_v0  ;;  %v1949_v6 = vpop.f32.mrb[4].mxu0 }
  0xf4   : > { %1185 = vst.msk [vmem:[%s2366_s8 + $0x80] sm:$0xf] %vm1152_vm3, %v1870_v1  ;;  %1156 = vst.msk [vmem:[%s2366_s8 + $0xc] sm:$0xf] %vm1152_vm3, %v1841_v2  ;;  %v1871_v7 = vpack.c.bf16 %v865_v3, %v865_v3  ;;  %v602_v8 = vadd.f32 %v1949_v6, %v2356_v38  ;;  %v1981_v9 = vpop.f32.mrb[4].mxu1  ;;  %v593_v10 = vpop.f32.mrb[5].mxu0 }
  0xf5   : > { %1188 = vst.msk [vmem:[%s2366_s8 + $0x8c] sm:$0xf] %vm1152_vm3, %v1873_v4  ;;  %1154 = vst.msk [vmem:[%s2366_s8 + $0x4] sm:$0xf] %vm1152_vm3, %v1839_v5  ;;  %v730_v11 = vadd.f32 %v1981_v9, %v2356_v38  ;;  %v594_v12 = vadd.f32 %v2356_v38, %v593_v10  ;;  %v721_v13 = vpop.f32.mrb[5].mxu1  ;;  %v1950_v14 = vpop.f32.mrb[6].mxu0 }
  0xf6   : > { %1186 = vst.msk [vmem:[%s2366_s8 + $0x84] sm:$0xf] %vm1152_vm3, %v1871_v7  ;;  %v838_v15 = vmax.f32 %v602_v8, 0.0  ;;  %v722_v16 = vadd.f32 %v2356_v38, %v721_v13  ;;  %v605_v17 = vadd.f32 %v1950_v14, %v2356_v38  ;;  %v1982_v18 = vpop.f32.mrb[6].mxu1  ;;  %v596_v19 = vpop.f32.mrb[7].mxu0 }
  0xf7   : > { %v870_v20 = vmax.f32 %v730_v11, 0.0  ;;  %v836_v21 = vmax.f32 %v594_v12, 0.0  ;;  %v733_v22 = vadd.f32 %v1982_v18, %v2356_v38  ;;  %v597_v23 = vadd.f32 %v2356_v38, %v596_v19  ;;  %v724_v24 = vpop.f32.mrb[7].mxu1 }
  0xf8   : > { %v1844_v25 = vpack.c.bf16 %v838_v15, %v838_v15  ;;  %v868_v26 = vmax.f32 %v722_v16, 0.0  ;;  %v839_v27 = vmax.f32 %v605_v17, 0.0  ;;  %v725_v28 = vadd.f32 %v2356_v38, %v724_v24 }
  0xf9   : > { %v1876_v29 = vpack.c.bf16 %v870_v20, %v870_v20  ;;  %v1842_v30 = vpack.c.bf16 %v836_v21, %v836_v21  ;;  %v871_v31 = vmax.f32 %v733_v22, 0.0  ;;  %v837_v32 = vmax.f32 %v597_v23, 0.0 }
  0xfa   : > { %1159 = vst.msk [vmem:[%s2366_s8 + $0x18] sm:$0xf] %vm1152_vm3, %v1844_v25  ;;  %v1874_v33 = vpack.c.bf16 %v868_v26, %v868_v26  ;;  %v1845_v34 = vpack.c.bf16 %v839_v27, %v839_v27  ;;  %v869_v35 = vmax.f32 %v725_v28, 0.0 }
  0xfb   : > { %1191 = vst.msk [vmem:[%s2366_s8 + $0x98] sm:$0xf] %vm1152_vm3, %v1876_v29  ;;  %1157 = vst.msk [vmem:[%s2366_s8 + $0x10] sm:$0xf] %vm1152_vm3, %v1842_v30  ;;  %v1877_v36 = vpack.c.bf16 %v871_v31, %v871_v31  ;;  %v1843_v37 = vpack.c.bf16 %v837_v32, %v837_v32  ;;  %v1953_v39 = vpop.f32.mrb[8].mxu0 }
  0xfc   : > { %1189 = vst.msk [vmem:[%s2366_s8 + $0x90] sm:$0xf] %vm1152_vm3, %v1874_v33  ;;  %1160 = vst.msk [vmem:[%s2366_s8 + $0x1c] sm:$0xf] %vm1152_vm3, %v1845_v34  ;;  %v1875_v40 = vpack.c.bf16 %v869_v35, %v869_v35  ;;  %v618_v41 = vadd.f32 %v1953_v39, %v2356_v38  ;;  %v1985_v42 = vpop.f32.mrb[8].mxu1  ;;  %v609_v43 = vpop.f32.mrb[9].mxu0 }
  0xfd   : > { %1192 = vst.msk [vmem:[%s2366_s8 + $0x9c] sm:$0xf] %vm1152_vm3, %v1877_v36  ;;  %1158 = vst.msk [vmem:[%s2366_s8 + $0x14] sm:$0xf] %vm1152_vm3, %v1843_v37  ;;  %v746_v44 = vadd.f32 %v1985_v42, %v2356_v38  ;;  %v610_v45 = vadd.f32 %v2356_v38, %v609_v43  ;;  %v737_v46 = vpop.f32.mrb[9].mxu1  ;;  %v1954_v47 = vpop.f32.mrb[10].mxu0 }
  0xfe   : > { %1190 = vst.msk [vmem:[%s2366_s8 + $0x94] sm:$0xf] %vm1152_vm3, %v1875_v40  ;;  %v842_v48 = vmax.f32 %v618_v41, 0.0  ;;  %v738_v49 = vadd.f32 %v2356_v38, %v737_v46  ;;  %v621_v50 = vadd.f32 %v1954_v47, %v2356_v38  ;;  %v1986_v51 = vpop.f32.mrb[10].mxu1  ;;  %v612_v52 = vpop.f32.mrb[11].mxu0 }
  0xff   : > { %v874_v53 = vmax.f32 %v746_v44, 0.0  ;;  %v840_v54 = vmax.f32 %v610_v45, 0.0  ;;  %v749_v55 = vadd.f32 %v1986_v51, %v2356_v38  ;;  %v613_v56 = vadd.f32 %v2356_v38, %v612_v52  ;;  %v740_v57 = vpop.f32.mrb[11].mxu1 }
 0x100   : > { %v1848_v58 = vpack.c.bf16 %v842_v48, %v842_v48  ;;  %v872_v59 = vmax.f32 %v738_v49, 0.0  ;;  %v843_v60 = vmax.f32 %v621_v50, 0.0  ;;  %v741_v61 = vadd.f32 %v2356_v38, %v740_v57 }
 0x101   : > { %v1880_v62 = vpack.c.bf16 %v874_v53, %v874_v53  ;;  %v1846_v63 = vpack.c.bf16 %v840_v54, %v840_v54  ;;  %v875_v0 = vmax.f32 %v749_v55, 0.0  ;;  %v841_v1 = vmax.f32 %v613_v56, 0.0 }
 0x102   : > { %1163 = vst.msk [vmem:[%s2366_s8 + $0x28] sm:$0xf] %vm1152_vm3, %v1848_v58  ;;  %v1878_v2 = vpack.c.bf16 %v872_v59, %v872_v59  ;;  %v1849_v3 = vpack.c.bf16 %v843_v60, %v843_v60  ;;  %v873_v4 = vmax.f32 %v741_v61, 0.0 }
 0x103   : > { %1195 = vst.msk [vmem:[%s2366_s8 + $0xa8] sm:$0xf] %vm1152_vm3, %v1880_v62  ;;  %1161 = vst.msk [vmem:[%s2366_s8 + $0x20] sm:$0xf] %vm1152_vm3, %v1846_v63  ;;  %v1881_v5 = vpack.c.bf16 %v875_v0, %v875_v0  ;;  %v1847_v6 = vpack.c.bf16 %v841_v1, %v841_v1  ;;  %v1957_v7 = vpop.f32.mrb[12].mxu0 }
 0x104   : > { %1193 = vst.msk [vmem:[%s2366_s8 + $0xa0] sm:$0xf] %vm1152_vm3, %v1878_v2  ;;  %1164 = vst.msk [vmem:[%s2366_s8 + $0x2c] sm:$0xf] %vm1152_vm3, %v1849_v3  ;;  %v1879_v8 = vpack.c.bf16 %v873_v4, %v873_v4  ;;  %v634_v9 = vadd.f32 %v1957_v7, %v2356_v38  ;;  %v1989_v10 = vpop.f32.mrb[12].mxu1  ;;  %v625_v11 = vpop.f32.mrb[13].mxu0 }
 0x105   : > { %1196 = vst.msk [vmem:[%s2366_s8 + $0xac] sm:$0xf] %vm1152_vm3, %v1881_v5  ;;  %1162 = vst.msk [vmem:[%s2366_s8 + $0x24] sm:$0xf] %vm1152_vm3, %v1847_v6  ;;  %v762_v12 = vadd.f32 %v1989_v10, %v2356_v38  ;;  %v626_v13 = vadd.f32 %v2356_v38, %v625_v11  ;;  %v753_v14 = vpop.f32.mrb[13].mxu1  ;;  %v1958_v15 = vpop.f32.mrb[14].mxu0 }
 0x106   : > { %1194 = vst.msk [vmem:[%s2366_s8 + $0xa4] sm:$0xf] %vm1152_vm3, %v1879_v8  ;;  %v846_v16 = vmax.f32 %v634_v9, 0.0  ;;  %v754_v17 = vadd.f32 %v2356_v38, %v753_v14  ;;  %v637_v18 = vadd.f32 %v1958_v15, %v2356_v38  ;;  %v1990_v19 = vpop.f32.mrb[14].mxu1  ;;  %v628_v20 = vpop.f32.mrb[15].mxu0 }
 0x107   : > { %v878_v21 = vmax.f32 %v762_v12, 0.0  ;;  %v844_v22 = vmax.f32 %v626_v13, 0.0  ;;  %v765_v23 = vadd.f32 %v1990_v19, %v2356_v38  ;;  %v629_v24 = vadd.f32 %v2356_v38, %v628_v20  ;;  %v756_v25 = vpop.f32.mrb[15].mxu1 }
 0x108   : > { %v1852_v26 = vpack.c.bf16 %v846_v16, %v846_v16  ;;  %v876_v27 = vmax.f32 %v754_v17, 0.0  ;;  %v847_v28 = vmax.f32 %v637_v18, 0.0  ;;  %v757_v29 = vadd.f32 %v2356_v38, %v756_v25 }
 0x109   : > { %v1884_v30 = vpack.c.bf16 %v878_v21, %v878_v21  ;;  %v1850_v31 = vpack.c.bf16 %v844_v22, %v844_v22  ;;  %v879_v32 = vmax.f32 %v765_v23, 0.0  ;;  %v845_v33 = vmax.f32 %v629_v24, 0.0 }
 0x10a   : > { %1167 = vst.msk [vmem:[%s2366_s8 + $0x38] sm:$0xf] %vm1152_vm3, %v1852_v26  ;;  %v1882_v34 = vpack.c.bf16 %v876_v27, %v876_v27  ;;  %v1853_v35 = vpack.c.bf16 %v847_v28, %v847_v28  ;;  %v877_v36 = vmax.f32 %v757_v29, 0.0 }
 0x10b   : > { %1199 = vst.msk [vmem:[%s2366_s8 + $0xb8] sm:$0xf] %vm1152_vm3, %v1884_v30  ;;  %1165 = vst.msk [vmem:[%s2366_s8 + $0x30] sm:$0xf] %vm1152_vm3, %v1850_v31  ;;  %v1885_v37 = vpack.c.bf16 %v879_v32, %v879_v32  ;;  %v1851_v39 = vpack.c.bf16 %v845_v33, %v845_v33  ;;  %v1961_v40 = vpop.f32.mrb[16].mxu0 }
 0x10c   : > { %1197 = vst.msk [vmem:[%s2366_s8 + $0xb0] sm:$0xf] %vm1152_vm3, %v1882_v34  ;;  %1168 = vst.msk [vmem:[%s2366_s8 + $0x3c] sm:$0xf] %vm1152_vm3, %v1853_v35  ;;  %v1883_v41 = vpack.c.bf16 %v877_v36, %v877_v36  ;;  %v650_v42 = vadd.f32 %v1961_v40, %v2356_v38  ;;  %v1993_v43 = vpop.f32.mrb[16].mxu1  ;;  %v641_v44 = vpop.f32.mrb[17].mxu0 }
 0x10d   : > { %1200 = vst.msk [vmem:[%s2366_s8 + $0xbc] sm:$0xf] %vm1152_vm3, %v1885_v37  ;;  %1166 = vst.msk [vmem:[%s2366_s8 + $0x34] sm:$0xf] %vm1152_vm3, %v1851_v39  ;;  %v778_v45 = vadd.f32 %v1993_v43, %v2356_v38  ;;  %v642_v46 = vadd.f32 %v2356_v38, %v641_v44  ;;  %v769_v47 = vpop.f32.mrb[17].mxu1  ;;  %v1962_v48 = vpop.f32.mrb[18].mxu0 }
 0x10e   : > { %1198 = vst.msk [vmem:[%s2366_s8 + $0xb4] sm:$0xf] %vm1152_vm3, %v1883_v41  ;;  %v850_v49 = vmax.f32 %v650_v42, 0.0  ;;  %v770_v50 = vadd.f32 %v2356_v38, %v769_v47  ;;  %v653_v51 = vadd.f32 %v1962_v48, %v2356_v38  ;;  %v1994_v52 = vpop.f32.mrb[18].mxu1  ;;  %v644_v53 = vpop.f32.mrb[19].mxu0 }
 0x10f   : > { %v882_v54 = vmax.f32 %v778_v45, 0.0  ;;  %v848_v55 = vmax.f32 %v642_v46, 0.0  ;;  %v781_v56 = vadd.f32 %v1994_v52, %v2356_v38  ;;  %v645_v57 = vadd.f32 %v2356_v38, %v644_v53  ;;  %v772_v58 = vpop.f32.mrb[19].mxu1 }
 0x110   : > { %v1856_v59 = vpack.c.bf16 %v850_v49, %v850_v49  ;;  %v880_v60 = vmax.f32 %v770_v50, 0.0  ;;  %v851_v61 = vmax.f32 %v653_v51, 0.0  ;;  %v773_v62 = vadd.f32 %v2356_v38, %v772_v58 }
 0x111   : > { %v1888_v63 = vpack.c.bf16 %v882_v54, %v882_v54  ;;  %v1854_v0 = vpack.c.bf16 %v848_v55, %v848_v55  ;;  %v883_v1 = vmax.f32 %v781_v56, 0.0  ;;  %v849_v2 = vmax.f32 %v645_v57, 0.0 }
 0x112   : > { %1171 = vst.msk [vmem:[%s2366_s8 + $0x48] sm:$0xf] %vm1152_vm3, %v1856_v59  ;;  %v1886_v3 = vpack.c.bf16 %v880_v60, %v880_v60  ;;  %v1857_v4 = vpack.c.bf16 %v851_v61, %v851_v61  ;;  %v881_v5 = vmax.f32 %v773_v62, 0.0 }
 0x113   : > { %1203 = vst.msk [vmem:[%s2366_s8 + $0xc8] sm:$0xf] %vm1152_vm3, %v1888_v63  ;;  %1169 = vst.msk [vmem:[%s2366_s8 + $0x40] sm:$0xf] %vm1152_vm3, %v1854_v0  ;;  %v1889_v6 = vpack.c.bf16 %v883_v1, %v883_v1  ;;  %v1855_v7 = vpack.c.bf16 %v849_v2, %v849_v2  ;;  %v1965_v8 = vpop.f32.mrb[20].mxu0 }
 0x114   : > { %1201 = vst.msk [vmem:[%s2366_s8 + $0xc0] sm:$0xf] %vm1152_vm3, %v1886_v3  ;;  %1172 = vst.msk [vmem:[%s2366_s8 + $0x4c] sm:$0xf] %vm1152_vm3, %v1857_v4  ;;  %v1887_v9 = vpack.c.bf16 %v881_v5, %v881_v5  ;;  %v666_v10 = vadd.f32 %v1965_v8, %v2356_v38  ;;  %v1997_v11 = vpop.f32.mrb[20].mxu1  ;;  %v657_v12 = vpop.f32.mrb[21].mxu0 }
 0x115   : > { %1204 = vst.msk [vmem:[%s2366_s8 + $0xcc] sm:$0xf] %vm1152_vm3, %v1889_v6  ;;  %1170 = vst.msk [vmem:[%s2366_s8 + $0x44] sm:$0xf] %vm1152_vm3, %v1855_v7  ;;  %v794_v13 = vadd.f32 %v1997_v11, %v2356_v38  ;;  %v658_v14 = vadd.f32 %v2356_v38, %v657_v12  ;;  %v785_v15 = vpop.f32.mrb[21].mxu1  ;;  %v1966_v16 = vpop.f32.mrb[22].mxu0 }
 0x116   : > { %1202 = vst.msk [vmem:[%s2366_s8 + $0xc4] sm:$0xf] %vm1152_vm3, %v1887_v9  ;;  %v854_v17 = vmax.f32 %v666_v10, 0.0  ;;  %v786_v18 = vadd.f32 %v2356_v38, %v785_v15  ;;  %v669_v19 = vadd.f32 %v1966_v16, %v2356_v38  ;;  %v1998_v20 = vpop.f32.mrb[22].mxu1  ;;  %v660_v21 = vpop.f32.mrb[23].mxu0 }
 0x117   : > { %v886_v22 = vmax.f32 %v794_v13, 0.0  ;;  %v852_v23 = vmax.f32 %v658_v14, 0.0  ;;  %v797_v24 = vadd.f32 %v1998_v20, %v2356_v38  ;;  %v661_v25 = vadd.f32 %v2356_v38, %v660_v21  ;;  %v788_v26 = vpop.f32.mrb[23].mxu1 }
 0x118   : > { %v1860_v27 = vpack.c.bf16 %v854_v17, %v854_v17  ;;  %v884_v28 = vmax.f32 %v786_v18, 0.0  ;;  %v855_v29 = vmax.f32 %v669_v19, 0.0  ;;  %v789_v30 = vadd.f32 %v2356_v38, %v788_v26 }
 0x119   : > { %v1892_v31 = vpack.c.bf16 %v886_v22, %v886_v22  ;;  %v1858_v32 = vpack.c.bf16 %v852_v23, %v852_v23  ;;  %v887_v33 = vmax.f32 %v797_v24, 0.0  ;;  %v853_v34 = vmax.f32 %v661_v25, 0.0 }
 0x11a   : > { %1175 = vst.msk [vmem:[%s2366_s8 + $0x58] sm:$0xf] %vm1152_vm3, %v1860_v27  ;;  %v1890_v35 = vpack.c.bf16 %v884_v28, %v884_v28  ;;  %v1861_v36 = vpack.c.bf16 %v855_v29, %v855_v29  ;;  %v885_v37 = vmax.f32 %v789_v30, 0.0 }
 0x11b   : > { %1207 = vst.msk [vmem:[%s2366_s8 + $0xd8] sm:$0xf] %vm1152_vm3, %v1892_v31  ;;  %1173 = vst.msk [vmem:[%s2366_s8 + $0x50] sm:$0xf] %vm1152_vm3, %v1858_v32  ;;  %v1893_v39 = vpack.c.bf16 %v887_v33, %v887_v33  ;;  %v1859_v40 = vpack.c.bf16 %v853_v34, %v853_v34  ;;  %v1969_v41 = vpop.f32.mrb[24].mxu0 }
 0x11c   : > { %1205 = vst.msk [vmem:[%s2366_s8 + $0xd0] sm:$0xf] %vm1152_vm3, %v1890_v35  ;;  %1176 = vst.msk [vmem:[%s2366_s8 + $0x5c] sm:$0xf] %vm1152_vm3, %v1861_v36  ;;  %v1891_v42 = vpack.c.bf16 %v885_v37, %v885_v37  ;;  %v682_v43 = vadd.f32 %v1969_v41, %v2356_v38  ;;  %v2001_v44 = vpop.f32.mrb[24].mxu1  ;;  %v673_v45 = vpop.f32.mrb[25].mxu0 }
 0x11d   : > { %1208 = vst.msk [vmem:[%s2366_s8 + $0xdc] sm:$0xf] %vm1152_vm3, %v1893_v39  ;;  %1174 = vst.msk [vmem:[%s2366_s8 + $0x54] sm:$0xf] %vm1152_vm3, %v1859_v40  ;;  %v810_v46 = vadd.f32 %v2001_v44, %v2356_v38  ;;  %v674_v47 = vadd.f32 %v2356_v38, %v673_v45  ;;  %v801_v48 = vpop.f32.mrb[25].mxu1  ;;  %v1970_v49 = vpop.f32.mrb[26].mxu0 }
 0x11e   : > { %1206 = vst.msk [vmem:[%s2366_s8 + $0xd4] sm:$0xf] %vm1152_vm3, %v1891_v42  ;;  %v858_v50 = vmax.f32 %v682_v43, 0.0  ;;  %v802_v51 = vadd.f32 %v2356_v38, %v801_v48  ;;  %v685_v52 = vadd.f32 %v1970_v49, %v2356_v38  ;;  %v2002_v53 = vpop.f32.mrb[26].mxu1  ;;  %v676_v54 = vpop.f32.mrb[27].mxu0 }
 0x11f   : > { %v890_v55 = vmax.f32 %v810_v46, 0.0  ;;  %v856_v56 = vmax.f32 %v674_v47, 0.0  ;;  %v813_v57 = vadd.f32 %v2002_v53, %v2356_v38  ;;  %v677_v58 = vadd.f32 %v2356_v38, %v676_v54  ;;  %v804_v59 = vpop.f32.mrb[27].mxu1 }
 0x120   : > { %v1864_v60 = vpack.c.bf16 %v858_v50, %v858_v50  ;;  %v888_v61 = vmax.f32 %v802_v51, 0.0  ;;  %v859_v62 = vmax.f32 %v685_v52, 0.0  ;;  %v805_v63 = vadd.f32 %v2356_v38, %v804_v59 }
 0x121   : > { %v1896_v0 = vpack.c.bf16 %v890_v55, %v890_v55  ;;  %v1862_v1 = vpack.c.bf16 %v856_v56, %v856_v56  ;;  %v891_v2 = vmax.f32 %v813_v57, 0.0  ;;  %v857_v3 = vmax.f32 %v677_v58, 0.0 }
 0x122   : > { %1179 = vst.msk [vmem:[%s2366_s8 + $0x68] sm:$0xf] %vm1152_vm3, %v1864_v60  ;;  %v1894_v4 = vpack.c.bf16 %v888_v61, %v888_v61  ;;  %v1865_v5 = vpack.c.bf16 %v859_v62, %v859_v62  ;;  %v889_v6 = vmax.f32 %v805_v63, 0.0 }
 0x123   : > { %1211 = vst.msk [vmem:[%s2366_s8 + $0xe8] sm:$0xf] %vm1152_vm3, %v1896_v0  ;;  %1177 = vst.msk [vmem:[%s2366_s8 + $0x60] sm:$0xf] %vm1152_vm3, %v1862_v1  ;;  %v1897_v7 = vpack.c.bf16 %v891_v2, %v891_v2  ;;  %v1863_v8 = vpack.c.bf16 %v857_v3, %v857_v3  ;;  %v1973_v9 = vpop.f32.mrb[28].mxu0 }
 0x124   : > { %1209 = vst.msk [vmem:[%s2366_s8 + $0xe0] sm:$0xf] %vm1152_vm3, %v1894_v4  ;;  %1180 = vst.msk [vmem:[%s2366_s8 + $0x6c] sm:$0xf] %vm1152_vm3, %v1865_v5  ;;  %v1895_v10 = vpack.c.bf16 %v889_v6, %v889_v6  ;;  %v698_v11 = vadd.f32 %v1973_v9, %v2356_v38  ;;  %v2005_v12 = vpop.f32.mrb[28].mxu1  ;;  %v689_v13 = vpop.f32.mrb[29].mxu0 }
 0x125   : > { %1212 = vst.msk [vmem:[%s2366_s8 + $0xec] sm:$0xf] %vm1152_vm3, %v1897_v7  ;;  %1178 = vst.msk [vmem:[%s2366_s8 + $0x64] sm:$0xf] %vm1152_vm3, %v1863_v8  ;;  %v826_v14 = vadd.f32 %v2005_v12, %v2356_v38  ;;  %v690_v15 = vadd.f32 %v2356_v38, %v689_v13  ;;  %v817_v16 = vpop.f32.mrb[29].mxu1  ;;  %v1974_v17 = vpop.f32.mrb[30].mxu0 }
 0x126   : > { %1210 = vst.msk [vmem:[%s2366_s8 + $0xe4] sm:$0xf] %vm1152_vm3, %v1895_v10  ;;  %v862_v18 = vmax.f32 %v698_v11, 0.0  ;;  %v818_v19 = vadd.f32 %v2356_v38, %v817_v16  ;;  %v701_v20 = vadd.f32 %v1974_v17, %v2356_v38  ;;  %v2006_v21 = vpop.f32.mrb[30].mxu1  ;;  %v692_v22 = vpop.f32.mrb[31].mxu0 }
 0x127   : > { %v894_v23 = vmax.f32 %v826_v14, 0.0  ;;  %v860_v24 = vmax.f32 %v690_v15, 0.0  ;;  %v829_v25 = vadd.f32 %v2006_v21, %v2356_v38  ;;  %v693_v26 = vadd.f32 %v2356_v38, %v692_v22  ;;  %v820_v27 = vpop.f32.mrb[31].mxu1 }
 0x128   : > { %v1868_v28 = vpack.c.bf16 %v862_v18, %v862_v18  ;;  %v892_v29 = vmax.f32 %v818_v19, 0.0  ;;  %v863_v30 = vmax.f32 %v701_v20, 0.0  ;;  %v821_v31 = vadd.f32 %v2356_v38, %v820_v27  ;;  %1223 = sbr.rel (!%p2268_p4) target bundleno = 394 (0x18a), region = 36 }
 0x129   : > { %v1900_v32 = vpack.c.bf16 %v894_v23, %v894_v23  ;;  %v1866_v33 = vpack.c.bf16 %v860_v24, %v860_v24  ;;  %v895_v34 = vmax.f32 %v829_v25, 0.0  ;;  %v861_v35 = vmax.f32 %v693_v26, 0.0 }
 0x12a   : > { %1183 = vst.msk [vmem:[%s2366_s8 + $0x78] sm:$0xf] %vm1152_vm3, %v1868_v28  ;;  %v1898_v36 = vpack.c.bf16 %v892_v29, %v892_v29  ;;  %v1869_v37 = vpack.c.bf16 %v863_v30, %v863_v30  ;;  %v893_v39 = vmax.f32 %v821_v31, 0.0 }
 0x12b   : > { %1215 = vst.msk [vmem:[%s2366_s8 + $0xf8] sm:$0xf] %vm1152_vm3, %v1900_v32  ;;  %1181 = vst.msk [vmem:[%s2366_s8 + $0x70] sm:$0xf] %vm1152_vm3, %v1866_v33  ;;  %v1901_v40 = vpack.c.bf16 %v895_v34, %v895_v34  ;;  %v1867_v41 = vpack.c.bf16 %v861_v35, %v861_v35 }
 0x12c   : > { %1213 = vst.msk [vmem:[%s2366_s8 + $0xf0] sm:$0xf] %vm1152_vm3, %v1898_v36  ;;  %1184 = vst.msk [vmem:[%s2366_s8 + $0x7c] sm:$0xf] %vm1152_vm3, %v1869_v37  ;;  %v1899_v38 = vpack.c.bf16 %v893_v39, %v893_v39 }
 0x12d   : > { %1216 = vst.msk [vmem:[%s2366_s8 + $0xfc] sm:$0xf] %vm1152_vm3, %v1901_v40  ;;  %1182 = vst.msk [vmem:[%s2366_s8 + $0x74] sm:$0xf] %vm1152_vm3, %v1867_v41 }
 0x12e   : > { %1214 = vst.msk [vmem:[%s2366_s8 + $0xf4] sm:$0xf] %vm1152_vm3, %v1899_v38 }
 0x12f   : > { %s2763_s9 = smov (!%p1226_p8, %s1225_s9), 64 }
 0x130   : > { %s1823_s17 = sshll.u32 %s2763_s9, 6 }
 0x131   : > { %p1826_p9 = scmp.eq.s32.totalorder %s1823_s17, 0 }
 0x132   : > { %s2565_s18 = sshrl.u32 (!%p1826_p9), %s2763_s9, 6 }
 0x133   : > { %1234 = sbr.rel (%p1826_p9) target bundleno = 394 (0x18a), region = 40  ;;  %p1827_p10 = scmp.le.s32.totalorder (!%p1826_p9), %s2565_s18, 0 }
 0x13a   : > { %1639 = sbr.rel (%p1827_p10) target bundleno = 373 (0x175), region = 112  ;;  %s2756_s15 = smov (!%p1827_p10), %s2559_s14 }
 0x13b   : > { %s2757_s20 = smov (!%p1827_p10), %s2366_s8  ;;  %s2574_s21 = smov (!%p1827_p10), 0  }
 0x13c   : > { %s2576_s22 = smov (!%p1827_p10), 0  }
 0x141 LB: >> { %v1250_v42 = vld [vmem:[%s2196_s20] sm:$0xf]  ;;  %v1252_v43 = vld [vmem:[%s2196_s20 + $0x4] sm:$0xf]  ;;  %v1254_v44 = vld [vmem:[%s2196_s20 + $0x8] sm:$0xf]  ;;  %s2204_s22 = sphi %s2576_s22, %s1244_s22   ;;  %s2200_s21 = sphi %s2574_s21, %s2758_s21   ;;  %s2196_s20 = sphi %s2757_s20, %s1383_s20   ;;  %s2192_s15 = sphi %s2756_s15, %s1384_s15  }
 0x142   : >> { %1251 = vst [vmem:[%s2192_s15] sm:$0xf] %v1250_v42  ;;  %1253 = vst [vmem:[%s2192_s15 + $0x4] sm:$0xf] %v1252_v43  ;;  %v1256_v45 = vld [vmem:[%s2196_s20 + $0xc] sm:$0xf]  ;;  %s1378_s23 = sadd.s32 1, %s2200_s21 }
 0x143   : >> { %1255 = vst [vmem:[%s2192_s15 + $0x8] sm:$0xf] %v1254_v44  ;;  %v1258_v46 = vld [vmem:[%s2196_s20 + $0x10] sm:$0xf]  ;;  %v1260_v47 = vld [vmem:[%s2196_s20 + $0x14] sm:$0xf]  ;;  %p1379_p11 = scmp.ge.s32.totalorder %s1378_s23, %s2565_s18 }
 0x144   : >> { %1257 = vst [vmem:[%s2192_s15 + $0xc] sm:$0xf] %v1256_v45  ;;  %1259 = vst [vmem:[%s2192_s15 + $0x10] sm:$0xf] %v1258_v46  ;;  %v1262_v48 = vld [vmem:[%s2196_s20 + $0x18] sm:$0xf] }
 0x145   : >> { %1261 = vst [vmem:[%s2192_s15 + $0x14] sm:$0xf] %v1260_v47  ;;  %v1264_v49 = vld [vmem:[%s2196_s20 + $0x1c] sm:$0xf]  ;;  %v1266_v50 = vld [vmem:[%s2196_s20 + $0x20] sm:$0xf] }
 0x146   : >> { %1263 = vst [vmem:[%s2192_s15 + $0x18] sm:$0xf] %v1262_v48  ;;  %1265 = vst [vmem:[%s2192_s15 + $0x1c] sm:$0xf] %v1264_v49  ;;  %v1268_v51 = vld [vmem:[%s2196_s20 + $0x24] sm:$0xf] }
 0x147   : >> { %1267 = vst [vmem:[%s2192_s15 + $0x20] sm:$0xf] %v1266_v50  ;;  %v1270_v52 = vld [vmem:[%s2196_s20 + $0x28] sm:$0xf]  ;;  %v1272_v53 = vld [vmem:[%s2196_s20 + $0x2c] sm:$0xf] }
 0x148   : >> { %1269 = vst [vmem:[%s2192_s15 + $0x24] sm:$0xf] %v1268_v51  ;;  %1271 = vst [vmem:[%s2192_s15 + $0x28] sm:$0xf] %v1270_v52  ;;  %v1274_v54 = vld [vmem:[%s2196_s20 + $0x30] sm:$0xf] }
 0x149   : >> { %1273 = vst [vmem:[%s2192_s15 + $0x2c] sm:$0xf] %v1272_v53  ;;  %v1276_v55 = vld [vmem:[%s2196_s20 + $0x34] sm:$0xf]  ;;  %v1278_v56 = vld [vmem:[%s2196_s20 + $0x38] sm:$0xf] }
 0x14a   : >> { %1275 = vst [vmem:[%s2192_s15 + $0x30] sm:$0xf] %v1274_v54  ;;  %1277 = vst [vmem:[%s2192_s15 + $0x34] sm:$0xf] %v1276_v55  ;;  %v1280_v57 = vld [vmem:[%s2196_s20 + $0x3c] sm:$0xf] }
 0x14b   : >> { %1279 = vst [vmem:[%s2192_s15 + $0x38] sm:$0xf] %v1278_v56  ;;  %v1282_v58 = vld [vmem:[%s2196_s20 + $0x40] sm:$0xf]  ;;  %v1284_v59 = vld [vmem:[%s2196_s20 + $0x44] sm:$0xf] }
 0x14c   : >> { %1281 = vst [vmem:[%s2192_s15 + $0x3c] sm:$0xf] %v1280_v57  ;;  %1283 = vst [vmem:[%s2192_s15 + $0x40] sm:$0xf] %v1282_v58  ;;  %v1286_v60 = vld [vmem:[%s2196_s20 + $0x48] sm:$0xf] }
 0x14d   : >> { %1285 = vst [vmem:[%s2192_s15 + $0x44] sm:$0xf] %v1284_v59  ;;  %v1288_v61 = vld [vmem:[%s2196_s20 + $0x4c] sm:$0xf]  ;;  %v1290_v62 = vld [vmem:[%s2196_s20 + $0x50] sm:$0xf] }
 0x14e   : >> { %1287 = vst [vmem:[%s2192_s15 + $0x48] sm:$0xf] %v1286_v60  ;;  %1289 = vst [vmem:[%s2192_s15 + $0x4c] sm:$0xf] %v1288_v61  ;;  %v1292_v63 = vld [vmem:[%s2196_s20 + $0x54] sm:$0xf] }
 0x14f   : >> { %1291 = vst [vmem:[%s2192_s15 + $0x50] sm:$0xf] %v1290_v62  ;;  %v1294_v0 = vld [vmem:[%s2196_s20 + $0x58] sm:$0xf]  ;;  %v1296_v1 = vld [vmem:[%s2196_s20 + $0x5c] sm:$0xf] }
 0x150   : >> { %1293 = vst [vmem:[%s2192_s15 + $0x54] sm:$0xf] %v1292_v63  ;;  %1295 = vst [vmem:[%s2192_s15 + $0x58] sm:$0xf] %v1294_v0  ;;  %v1298_v2 = vld [vmem:[%s2196_s20 + $0x60] sm:$0xf] }
 0x151   : >> { %1297 = vst [vmem:[%s2192_s15 + $0x5c] sm:$0xf] %v1296_v1  ;;  %v1300_v3 = vld [vmem:[%s2196_s20 + $0x64] sm:$0xf]  ;;  %v1302_v4 = vld [vmem:[%s2196_s20 + $0x68] sm:$0xf] }
 0x152   : >> { %1299 = vst [vmem:[%s2192_s15 + $0x60] sm:$0xf] %v1298_v2  ;;  %1301 = vst [vmem:[%s2192_s15 + $0x64] sm:$0xf] %v1300_v3  ;;  %v1304_v5 = vld [vmem:[%s2196_s20 + $0x6c] sm:$0xf] }
 0x153   : >> { %1303 = vst [vmem:[%s2192_s15 + $0x68] sm:$0xf] %v1302_v4  ;;  %v1306_v6 = vld [vmem:[%s2196_s20 + $0x70] sm:$0xf]  ;;  %v1308_v7 = vld [vmem:[%s2196_s20 + $0x74] sm:$0xf] }
 0x154   : >> { %1305 = vst [vmem:[%s2192_s15 + $0x6c] sm:$0xf] %v1304_v5  ;;  %1307 = vst [vmem:[%s2192_s15 + $0x70] sm:$0xf] %v1306_v6  ;;  %v1310_v8 = vld [vmem:[%s2196_s20 + $0x78] sm:$0xf] }
 0x155   : >> { %1309 = vst [vmem:[%s2192_s15 + $0x74] sm:$0xf] %v1308_v7  ;;  %v1312_v9 = vld [vmem:[%s2196_s20 + $0x7c] sm:$0xf]  ;;  %v1314_v10 = vld [vmem:[%s2196_s20 + $0x80] sm:$0xf] }
 0x156   : >> { %1311 = vst [vmem:[%s2192_s15 + $0x78] sm:$0xf] %v1310_v8  ;;  %1313 = vst [vmem:[%s2192_s15 + $0x7c] sm:$0xf] %v1312_v9  ;;  %v1316_v11 = vld [vmem:[%s2196_s20 + $0x84] sm:$0xf] }
 0x157   : >> { %1315 = vst [vmem:[%s2192_s15 + $0x80] sm:$0xf] %v1314_v10  ;;  %v1318_v12 = vld [vmem:[%s2196_s20 + $0x88] sm:$0xf]  ;;  %v1320_v13 = vld [vmem:[%s2196_s20 + $0x8c] sm:$0xf] }
 0x158   : >> { %1317 = vst [vmem:[%s2192_s15 + $0x84] sm:$0xf] %v1316_v11  ;;  %1319 = vst [vmem:[%s2192_s15 + $0x88] sm:$0xf] %v1318_v12  ;;  %v1322_v14 = vld [vmem:[%s2196_s20 + $0x90] sm:$0xf] }
 0x159   : >> { %1321 = vst [vmem:[%s2192_s15 + $0x8c] sm:$0xf] %v1320_v13  ;;  %v1324_v15 = vld [vmem:[%s2196_s20 + $0x94] sm:$0xf]  ;;  %v1326_v16 = vld [vmem:[%s2196_s20 + $0x98] sm:$0xf] }
 0x15a   : >> { %1323 = vst [vmem:[%s2192_s15 + $0x90] sm:$0xf] %v1322_v14  ;;  %1325 = vst [vmem:[%s2192_s15 + $0x94] sm:$0xf] %v1324_v15  ;;  %v1328_v17 = vld [vmem:[%s2196_s20 + $0x9c] sm:$0xf] }
 0x15b   : >> { %1327 = vst [vmem:[%s2192_s15 + $0x98] sm:$0xf] %v1326_v16  ;;  %v1330_v18 = vld [vmem:[%s2196_s20 + $0xa0] sm:$0xf]  ;;  %v1332_v19 = vld [vmem:[%s2196_s20 + $0xa4] sm:$0xf] }
 0x15c   : >> { %1329 = vst [vmem:[%s2192_s15 + $0x9c] sm:$0xf] %v1328_v17  ;;  %1331 = vst [vmem:[%s2192_s15 + $0xa0] sm:$0xf] %v1330_v18  ;;  %v1334_v20 = vld [vmem:[%s2196_s20 + $0xa8] sm:$0xf] }
 0x15d   : >> { %1333 = vst [vmem:[%s2192_s15 + $0xa4] sm:$0xf] %v1332_v19  ;;  %v1336_v21 = vld [vmem:[%s2196_s20 + $0xac] sm:$0xf]  ;;  %v1338_v22 = vld [vmem:[%s2196_s20 + $0xb0] sm:$0xf] }
 0x15e   : >> { %1335 = vst [vmem:[%s2192_s15 + $0xa8] sm:$0xf] %v1334_v20  ;;  %1337 = vst [vmem:[%s2192_s15 + $0xac] sm:$0xf] %v1336_v21  ;;  %v1340_v23 = vld [vmem:[%s2196_s20 + $0xb4] sm:$0xf] }
 0x15f   : >> { %1339 = vst [vmem:[%s2192_s15 + $0xb0] sm:$0xf] %v1338_v22  ;;  %v1342_v24 = vld [vmem:[%s2196_s20 + $0xb8] sm:$0xf]  ;;  %v1344_v25 = vld [vmem:[%s2196_s20 + $0xbc] sm:$0xf] }
 0x160   : >> { %1341 = vst [vmem:[%s2192_s15 + $0xb4] sm:$0xf] %v1340_v23  ;;  %1343 = vst [vmem:[%s2192_s15 + $0xb8] sm:$0xf] %v1342_v24  ;;  %v1346_v26 = vld [vmem:[%s2196_s20 + $0xc0] sm:$0xf] }
 0x161   : >> { %1345 = vst [vmem:[%s2192_s15 + $0xbc] sm:$0xf] %v1344_v25  ;;  %v1348_v27 = vld [vmem:[%s2196_s20 + $0xc4] sm:$0xf]  ;;  %v1350_v28 = vld [vmem:[%s2196_s20 + $0xc8] sm:$0xf] }
 0x162   : >> { %1347 = vst [vmem:[%s2192_s15 + $0xc0] sm:$0xf] %v1346_v26  ;;  %1349 = vst [vmem:[%s2192_s15 + $0xc4] sm:$0xf] %v1348_v27  ;;  %v1352_v29 = vld [vmem:[%s2196_s20 + $0xcc] sm:$0xf] }
 0x163   : >> { %1351 = vst [vmem:[%s2192_s15 + $0xc8] sm:$0xf] %v1350_v28  ;;  %v1354_v30 = vld [vmem:[%s2196_s20 + $0xd0] sm:$0xf]  ;;  %v1356_v31 = vld [vmem:[%s2196_s20 + $0xd4] sm:$0xf] }
 0x164   : >> { %1353 = vst [vmem:[%s2192_s15 + $0xcc] sm:$0xf] %v1352_v29  ;;  %1355 = vst [vmem:[%s2192_s15 + $0xd0] sm:$0xf] %v1354_v30  ;;  %v1358_v32 = vld [vmem:[%s2196_s20 + $0xd8] sm:$0xf] }
 0x165   : >> { %1357 = vst [vmem:[%s2192_s15 + $0xd4] sm:$0xf] %v1356_v31  ;;  %v1360_v33 = vld [vmem:[%s2196_s20 + $0xdc] sm:$0xf]  ;;  %v1362_v34 = vld [vmem:[%s2196_s20 + $0xe0] sm:$0xf] }
 0x166   : >> { %1359 = vst [vmem:[%s2192_s15 + $0xd8] sm:$0xf] %v1358_v32  ;;  %1361 = vst [vmem:[%s2192_s15 + $0xdc] sm:$0xf] %v1360_v33  ;;  %v1364_v35 = vld [vmem:[%s2196_s20 + $0xe4] sm:$0xf] }
 0x167   : >> { %1363 = vst [vmem:[%s2192_s15 + $0xe0] sm:$0xf] %v1362_v34  ;;  %v1366_v36 = vld [vmem:[%s2196_s20 + $0xe8] sm:$0xf]  ;;  %v1368_v37 = vld [vmem:[%s2196_s20 + $0xec] sm:$0xf] }
 0x168   : >> { %1365 = vst [vmem:[%s2192_s15 + $0xe4] sm:$0xf] %v1364_v35  ;;  %1367 = vst [vmem:[%s2192_s15 + $0xe8] sm:$0xf] %v1366_v36  ;;  %v1370_v39 = vld [vmem:[%s2196_s20 + $0xf0] sm:$0xf] }
 0x169   : >> { %1369 = vst [vmem:[%s2192_s15 + $0xec] sm:$0xf] %v1368_v37  ;;  %v1372_v40 = vld [vmem:[%s2196_s20 + $0xf4] sm:$0xf]  ;;  %v1374_v41 = vld [vmem:[%s2196_s20 + $0xf8] sm:$0xf] }
 0x16a   : >> { %1371 = vst [vmem:[%s2192_s15 + $0xf0] sm:$0xf] %v1370_v39  ;;  %1373 = vst [vmem:[%s2192_s15 + $0xf4] sm:$0xf] %v1372_v40  ;;  %v1376_v38 = vld [vmem:[%s2196_s20 + $0xfc] sm:$0xf] }
 0x16b   : >> { %1375 = vst [vmem:[%s2192_s15 + $0xf8] sm:$0xf] %v1374_v41  ;;  %1377 = vst [vmem:[%s2192_s15 + $0xfc] sm:$0xf] %v1376_v38  ;;  %s2765_s23 = smov (%p1379_p11, %s1378_s23), 0  ;;  %s1244_s22 = sadd.s32 1, %s2204_s22  }
 0x16c   : >> { %s1828_s24 = sshll.u32 %s2765_s23, 8  ;;  %p1243_p12 = scmp.ge.s32.totalorder %s1244_s22, %s2565_s18 }
 0x16d   : >> { %s1383_s20 = scalar_lea.vmem %s2366_s8, %s1828_s24 [#allocation2]   ;;  %s1384_s15 = scalar_lea.vmem %s2559_s14, %s1828_s24  }
 0x16e   : >> { %s2758_s21 = smov %s2765_s23  ;;  %1246 = sbr.rel (!%p1243_p12) target bundleno = 321 (0x141), region = 118 }
 0x175 PF: > { %s2733_s25 = sand.u32 63, %s2763_s9   ;;  %s1903_s26 = sshll.u32 %s2565_s18, 8 }
 0x176   : > { %s1389_s27 = scalar_lea.vmem %s2366_s8, %s1903_s26 [#allocation2]   ;;  %s1391_s28 = scalar_lea.vmem %s2559_s14, %s1903_s26  }
 0x177   : > { %p1833_p13 = scmp.le.s32.totalorder %s2733_s25, 0 }
 0x178   : > { %s2206_s29 = smov (!%p1833_p13), %s1391_s28   ;;  %s2210_s30 = smov (!%p1833_p13), %s1389_s27  }
 0x179   : > { %1653 = sbr.rel (%p1833_p13) target bundleno = 394 (0x18a), region = 123  ;;  %s2214_s4 = smov (!%p1833_p13), 0  }
 0x17a   : > { %s2218_s5 = smov (!%p1833_p13), 0  }
 0x180 LB: >> { %v1401_v42 = vld [vmem:[%s2212_s30] sm:$0xf]  ;;  %s1403_s6 = sadd.s32 1, %s2216_s4  ;;  %s1395_s5 = sadd.s32 1, %s2220_s5   ;;  %s2220_s5 = sphi %s2218_s5, %s1395_s5   ;;  %s2216_s4 = sphi %s2214_s4, %s2215_s4   ;;  %s2212_s30 = sphi %s2210_s30, %s1408_s30   ;;  %s2208_s29 = sphi %s2206_s29, %s1409_s29  }
 0x181   : >> { %1402 = vst [vmem:[%s2208_s29] sm:$0xf] %v1401_v42  ;;  %p1404_p0 = scmp.ge.s32.totalorder %s1403_s6, %s2733_s25  ;;  %p1394_p1 = scmp.ge.s32.totalorder %s1395_s5, %s2733_s25 }
 0x183   : >> { %s2767_s6 = smov (%p1404_p0, %s1403_s6), 0  ;;  %1397 = sbr.rel (!%p1394_p1) target bundleno = 384 (0x180), region = 129 }
 0x184   : >> { %s1834_s7 = sshll.u32 %s2767_s6, 2  ;;  %s2215_s4 = smov %s2767_s6  }
 0x185   : >> { %s1408_s30 = scalar_lea.vmem %s1389_s27, %s1834_s7 [#allocation2]   ;;  %s1409_s29 = scalar_lea.vmem %s1391_s28, %s1834_s7  }
 0x18a PF: > { %p10_p2 = scmp.ge.s32.totalorder %s2258_s16, 8   ;;  %s2759_s12 = smov %s2184_s13 }
 0x18b   : > { %s2760_s13 = smov %s2266_s19  ;;  %s2761_s14 = smov %s2258_s16 }
 0x18c   :  { %12 = sbr.rel (!%p10_p2) target bundleno = 2 (0x2), region = 140 }

</bundles_post_ra>
